<compile_context>
chip_gen: v5e
topology: v5e:2x2
jax: 0.10.0
libtpu: 0.0.40
codegen_flags: <defaults>
</compile_context>

<pallas_src>
import jax
import jax.numpy as jnp
from jax.experimental import pallas as pl
from jax.experimental.pallas import tpu as pltpu


_LANE_CANDIDATES = (2048, 1024, 512, 256, 128)   # lane-dense widths (multiples of 128)
_TARGET_BLOCK_ELEMS = 512 * 1024                 # ~2 MiB of f32 per block
_SMALL_INPUT_ELEMS = 64 * 1024                   # below this, plain JAX wins (launch overhead)


def _conv1x1_relu_kernel(w_ref, b_ref, x_ref, o_ref):
    # w_ref, b_ref: (1,) f32 scalars in SMEM.
    # x_ref, o_ref: (TILE_M, LANE_W) f32 tiles in VMEM (software-pipelined).
    o_ref[...] = jnp.maximum(x_ref[...] * w_ref[0] + b_ref[0], jnp.float32(0.0))


def conv1x1_relu(x_nchw: jax.Array,
                 weight: jax.Array,
                 bias: jax.Array,
                 *,
                 use_pallas: bool | None = None,
                 donate_input: bool = False) -> jax.Array:
    """Equivalent of QuantStub -> Conv2d(1,1,1) -> ReLU -> DeQuantStub (float mode).

    x_nchw: (N, 1, H, W) float32
    weight: (1, 1, 1, 1) float32  (PyTorch OIHW layout)
    bias:   (1,) float32
    """
    n, c, h, w = x_nchw.shape
    assert c == 1, "module is Conv2d(1, 1, 1): single input channel"

    w1 = weight.reshape(1).astype(jnp.float32)   # the single 1x1 tap
    b1 = bias.reshape(1).astype(jnp.float32)

    total = n * c * h * w
    lane_w = next((cand for cand in _LANE_CANDIDATES if total % cand == 0), None)

    if use_pallas is None:
        use_pallas = total >= _SMALL_INPUT_ELEMS

    if (not use_pallas) or (lane_w is None) or total == 0:
        # Plain-JAX fallback: a single fused elementwise op at HBM roofline.
        # Used for tiny tensors (kernel launch overhead dominates) and for
        # lengths not divisible by 128 (avoids full-tensor pad/slice copies).
        return jnp.maximum(x_nchw.astype(jnp.float32) * w1[0] + b1[0], 0.0)

    rows = total // lane_w
    tile_m = max(8, _TARGET_BLOCK_ELEMS // lane_w)   # multiple of 8 by construction
    if rows <= tile_m:
        # Full-extent block along rows: (8,128) divisibility is waived for full dims.
        tile_m = rows
    grid = (pl.cdiv(rows, tile_m),)                  # ragged last block handled by Pallas

    # Pure reshape (contiguous) — no data movement.
    x2d = x_nchw.astype(jnp.float32).reshape(rows, lane_w)

    block_bytes = tile_m * lane_w * 4
    # 2 double-buffered block pairs (in + out) + headroom; floor for internal scratch.
    vmem_limit = max(4 * 1024 * 1024, 2 * 2 * block_bytes + 2 * 1024 * 1024)

    out2d = pl.pallas_call(
        _conv1x1_relu_kernel,
        out_shape=jax.ShapeDtypeStruct((rows, lane_w), jnp.float32),
        grid=grid,
        in_specs=[
            pl.BlockSpec(memory_space=pltpu.SMEM),             # weight scalar
            pl.BlockSpec(memory_space=pltpu.SMEM),             # bias scalar
            pl.BlockSpec((tile_m, lane_w), lambda i: (i, 0)),  # pipelined input tiles
        ],
        out_specs=pl.BlockSpec((tile_m, lane_w), lambda i: (i, 0)),
        compiler_params=pltpu.CompilerParams(
            dimension_semantics=("parallel",),   # lets v7x shard the stream across both TCs
            vmem_limit_bytes=vmem_limit,
        ),
        # Optionally reuse the input buffer for the output (halves peak HBM footprint)
        # when the caller no longer needs x.
        input_output_aliases=({2: 0} if donate_input else {}),
    )(w1, b1, x2d)

    return out2d.reshape(n, c, h, w)


if __name__ == "__main__":
    key = jax.random.PRNGKey(0)
    kx, kw, kb, kx2 = jax.random.split(key, 4)

    # Deterministic synthetic parameters (PyTorch Conv2d(1,1,1) param shapes).
    weight = jax.random.normal(kw, (1, 1, 1, 1), dtype=jnp.float32) * 0.5
    bias = jax.random.normal(kb, (1,), dtype=jnp.float32) * 0.1

    # Small shape consistent with the module (C must be 1): total = 512 -> lane_w = 512.
    N, C, H, W = 2, 1, 16, 16
    x = jax.random.normal(kx, (N, C, H, W), dtype=jnp.float32)

    out = conv1x1_relu(x, weight, bias, use_pallas=True)   # force kernel path for the test
    out = jax.block_until_ready(out)

    ref = jnp.maximum(x * weight[0, 0, 0, 0] + bias[0], 0.0)
    assert out.shape == (N, C, H, W)
    assert jnp.allclose(out, ref, atol=1e-6), "mismatch vs reference (512-elem case)"

    # Second small case exercising a different lane width (total = 640 -> lane_w = 128).
    x2 = jax.random.normal(kx2, (2, 1, 16, 20), dtype=jnp.float32)
    out2 = jax.block_until_ready(conv1x1_relu(x2, weight, bias, use_pallas=True))
    ref2 = jnp.maximum(x2 * weight[0, 0, 0, 0] + bias[0], 0.0)
    assert jnp.allclose(out2, ref2, atol=1e-6), "mismatch vs reference (640-elem case)"

    print("KERNEL_OK")
</pallas_src>

<mosaic_0001>
module attributes {stable_mosaic.version = 11 : i64} {
  func.func @_conv1x1_relu_kernel(%arg0: i32, %arg1: memref<1xf32, #tpu.memory_space<smem>>, %arg2: memref<1xf32, #tpu.memory_space<smem>>, %arg3: memref<1x512xf32, #tpu.memory_space<vmem>>, %arg4: memref<1x512xf32, #tpu.memory_space<vmem>>) attributes {dimension_semantics = [#tpu.dimension_semantics<parallel>], iteration_bounds = array<i64: 1>, scalar_prefetch = 0 : i64, scratch_operands = 0 : i64, tpu.core_type = #tpu.core_type<tc>, window_params = [{transform_indices = @transform_0, window_bounds = array<i64: 1>}, {transform_indices = @transform_1, window_bounds = array<i64: 1>}, {transform_indices = @transform_2, window_bounds = array<i64: 1, 512>}, {transform_indices = @transform_3, window_bounds = array<i64: 1, 512>}]} {
    %c0 = arith.constant 0 : index
    %c0_0 = arith.constant 0 : index
    %0 = vector.load %arg3[%c0, %c0_0] : memref<1x512xf32, #tpu.memory_space<vmem>>, vector<1x512xf32>
    %c0_1 = arith.constant 0 : index
    %1 = memref.load %arg1[%c0_1] : memref<1xf32, #tpu.memory_space<smem>>
    %2 = vector.broadcast %1 : f32 to vector<1x512xf32>
    %3 = arith.mulf %0, %2 : vector<1x512xf32>
    %c0_2 = arith.constant 0 : index
    %4 = memref.load %arg2[%c0_2] : memref<1xf32, #tpu.memory_space<smem>>
    %5 = vector.broadcast %4 : f32 to vector<1x512xf32>
    %6 = arith.addf %3, %5 : vector<1x512xf32>
    %cst = arith.constant 0.000000e+00 : f32
    %7 = vector.broadcast %cst : f32 to vector<1x512xf32>
    %8 = arith.maximumf %6, %7 : vector<1x512xf32>
    %c0_3 = arith.constant 0 : index
    %c0_4 = arith.constant 0 : index
    %9 = vector.load %arg4[%c0_3, %c0_4] : memref<1x512xf32, #tpu.memory_space<vmem>>, vector<1x512xf32>
    tpu.vector_store %arg4[%c0_3, %c0_4], %8 {strides = array<i32>} : memref<1x512xf32, #tpu.memory_space<vmem>>, vector<1x512xf32>,
    return
  }
  func.func @transform_0(%arg0: i32) -> i32 {
    %c0_i32 = arith.constant 0 : i32
    %c0_i32_0 = arith.constant 0 : i32
    return %c0_i32 : i32
  }
  func.func @transform_1(%arg0: i32) -> i32 {
    %c0_i32 = arith.constant 0 : i32
    %c0_i32_0 = arith.constant 0 : i32
    return %c0_i32 : i32
  }
  func.func @transform_2(%arg0: i32) -> (i32, i32) {
    %c0_i32 = arith.constant 0 : i32
    %c0_i32_0 = arith.constant 0 : i32
    return %arg0, %c0_i32 : i32, i32
  }
  func.func @transform_3(%arg0: i32) -> (i32, i32) {
    %c0_i32 = arith.constant 0 : i32
    %c0_i32_0 = arith.constant 0 : i32
    return %arg0, %c0_i32 : i32, i32
  }
}

</mosaic_0001>

<bundles_post_ra>
// kernel: tpu_custom_call.1
= control target key start
LH: loop header
LB: loop body
LE: loop exit
PB: predicated region body
PF: predicated region fallthrough
CT: control target
= control target key end

     0   :  { %v25_v3 = vlaneseq  ;;  %s106_s0 = inlined_call_operand.<no memory space> [shape: f32[1], index: 0, kind: input, shape index: {}]   ;;  %s107_s1 = inlined_call_operand.<no memory space> [shape: f32[1], index: 1, kind: input, shape index: {}]   ;;  %s108_s2 = inlined_call_operand.vmem [shape: f32[1,512], index: 2, kind: input, shape index: {}]   ;;  %s109_s3 = inlined_call_operand.hbm [shape: f32[1,512], index: 3, kind: output, shape index: {}]  }
   0x1   :  { %v17_v0 = vld [vmem:[%s108_s2] sm:$0xf]  ;;  %v19_v1 = vstv %s106_s0  ;;  %v22_v2 = vstv %s107_s1 }
   0x2   :  { %10 = vsyncpa [#allocation5], 0  ;;  %v20_v4 = vmul.f32 %v19_v1, %v17_v0  ;;  %s73_s18 = smov [#allocation4]   ;;  %s37_s22 = sshll.u32 %s109_s3, 4  ;;  %vm27_vm0 = vcmp.lt.s32.totalorder %v25_v3, 512  ;;  %s38_s22 = int_to_ptr.hbm [resolvable:$true] %s37_s22 }
   0x3   :  { %s35_s19 = sshll.u32 %s73_s18, 4  ;;  %s36_s19 = int_to_ptr.vmem [resolvable:$true] %s35_s19 }
   0x4   :  { %v23_v5 = vadd.f32 %v22_v2, %v20_v4 }
   0x6   :  { %v24_v6 = vmax.f32 %v23_v5, 0.0 }
   0x8   :  { %29 = vst.msk [vmem:[#allocation4] sm:$0xf] %vm27_vm0, %v24_v6 }
   0x9   :  { %40 = dma.vmem_to_hbm [thread:$0]  %s36_s19, 64, %s38_s22, [#allocation5]  }
   0xa   :  { %71 = dma.done.wait [#allocation5], 64  }
   0xb   :  { %72 = vsyncadd [#allocation5], 4294967232 }
   0xc   :  { %45 = vsyncpa [#allocation5], 1 }

</bundles_post_ra>
